<compile_context>
chip_gen: v6e
topology: v6e:2x2x1
jax: 0.10.0
libtpu: 0.0.40
codegen_flags: <defaults>
</compile_context>

<pallas_src>
import jax
import jax.numpy as jnp
from jax.experimental import pallas as pl
from jax.experimental.pallas import tpu as pltpu


def lc_kernel(x_ref, o_ref):
    # x_ref: (TB, BH, W) VMEM tile of the flattened (N*C, H, W) input;
    #        only rows 0..2 along the BH axis are used.
    # o_ref: (TB, 2*W)  lane-dense VMEM tile: [ i_row | q_row ] per plane.
    W = x_ref.shape[-1]
    o_ref[:, 0:W] = x_ref[:, 0, :] - x_ref[:, 2, :]
    o_ref[:, W:2 * W] = x_ref[:, 1, :]


def lc_forward(x):
    N, C, H, W = x.shape
    assert H >= 3, "LC requires at least 3 rows along dim 2"

    NC = N * C
    itemsize = jnp.dtype(x.dtype).itemsize
    # Sublane multiple for this dtype (8 for 32-bit, 16 for 16-bit, 32 for 8-bit).
    sub = 8 * max(1, 4 // itemsize)
    # Only rows 0..2 are needed; block H down to the sublane multiple when
    # possible, otherwise use the full (small) H extent.
    BH = sub if H >= sub else H

    # Pick a block size along the flattened (N*C) axis targeting ~2 MiB input
    # blocks (good DMA efficiency, fits comfortably in scoped VMEM with
    # double buffering).
    per_plane_bytes = BH * W * itemsize
    target_bytes = 2 * 1024 * 1024
    TB = max(1, min(NC, target_bytes // max(per_plane_bytes, 1)))
    grid = (pl.cdiv(NC, TB),)

    # Free, contiguous reshape: (N, C, H, W) -> (N*C, H, W).
    x_flat = x.reshape(NC, H, W)

    out_flat = pl.pallas_call(
        lc_kernel,
        out_shape=jax.ShapeDtypeStruct((NC, 2 * W), x.dtype),
        grid_spec=pl.GridSpec(
            grid=grid,
            in_specs=[
                # H-block 0 covers rows 0..BH-1, which includes rows 0, 1, 2.
                pl.BlockSpec((TB, BH, W), lambda b: (b, 0, 0)),
            ],
            out_specs=pl.BlockSpec((TB, 2 * W), lambda b: (b, 0)),
        ),
        compiler_params=pltpu.CompilerParams(
            dimension_semantics=("parallel",)),
    )(x_flat)

    # Free, contiguous reshape: (N*C, 2*W) -> (N, C, 2, W).
    return out_flat.reshape(N, C, 2, W)


def lc_reference(x):
    i = x[:, :, 0:1, :] - x[:, :, 2:3, :]
    q = x[:, :, 1:2, :]
    return jnp.concatenate([i, q], axis=2)


if __name__ == "__main__":
    key = jax.random.PRNGKey(0)
    x = jax.random.normal(key, (2, 4, 16, 16), dtype=jnp.float32)

    out = jax.block_until_ready(lc_forward(x))

    ref = lc_reference(x)
    assert out.shape == (2, 4, 2, 16), out.shape
    assert jnp.allclose(out, ref, atol=1e-6, rtol=1e-6)

    print("KERNEL_OK")
</pallas_src>

<mosaic_0001>
module attributes {stable_mosaic.version = 11 : i64} {
  func.func @lc_kernel(%arg0: i32, %arg1: memref<8x8x16xf32, #tpu.memory_space<vmem>>, %arg2: memref<8x32xf32, #tpu.memory_space<vmem>>) attributes {dimension_semantics = [#tpu.dimension_semantics<parallel>], iteration_bounds = array<i64: 1>, scalar_prefetch = 0 : i64, scratch_operands = 0 : i64, tpu.core_type = #tpu.core_type<tc>, window_params = [{transform_indices = @transform_0, window_bounds = array<i64: 8, 8, 16>}, {transform_indices = @transform_1, window_bounds = array<i64: 8, 32>}]} {
    %c0 = arith.constant 0 : index
    %c0_0 = arith.constant 0 : index
    %c0_1 = arith.constant 0 : index
    %0 = vector.load %arg1[%c0, %c0_0, %c0_1] : memref<8x8x16xf32, #tpu.memory_space<vmem>>, vector<8x1x16xf32>
    %1 = vector.shape_cast %0 : vector<8x1x16xf32> to vector<8x16xf32>
    %c0_2 = arith.constant 0 : index
    %c2 = arith.constant 2 : index
    %c0_3 = arith.constant 0 : index
    %2 = vector.load %arg1[%c0_2, %c2, %c0_3] : memref<8x8x16xf32, #tpu.memory_space<vmem>>, vector<8x1x16xf32>
    %3 = vector.shape_cast %2 : vector<8x1x16xf32> to vector<8x16xf32>
    %4 = arith.subf %1, %3 : vector<8x16xf32>
    %c0_4 = arith.constant 0 : index
    %c0_5 = arith.constant 0 : index
    %5 = vector.load %arg2[%c0_4, %c0_5] : memref<8x32xf32, #tpu.memory_space<vmem>>, vector<8x16xf32>
    tpu.vector_store %arg2[%c0_4, %c0_5], %4 {strides = array<i32>} : memref<8x32xf32, #tpu.memory_space<vmem>>, vector<8x16xf32>,
    %c0_6 = arith.constant 0 : index
    %c1 = arith.constant 1 : index
    %c0_7 = arith.constant 0 : index
    %6 = vector.load %arg1[%c0_6, %c1, %c0_7] : memref<8x8x16xf32, #tpu.memory_space<vmem>>, vector<8x1x16xf32>
    %7 = vector.shape_cast %6 : vector<8x1x16xf32> to vector<8x16xf32>
    %c0_8 = arith.constant 0 : index
    %c16 = arith.constant 16 : index
    %8 = vector.load %arg2[%c0_8, %c16] : memref<8x32xf32, #tpu.memory_space<vmem>>, vector<8x16xf32>
    tpu.vector_store %arg2[%c0_8, %c16], %7 {strides = array<i32>} : memref<8x32xf32, #tpu.memory_space<vmem>>, vector<8x16xf32>,
    return
  }
  func.func @transform_0(%arg0: i32) -> (i32, i32, i32) {
    %c0_i32 = arith.constant 0 : i32
    %c0_i32_0 = arith.constant 0 : i32
    %c0_i32_1 = arith.constant 0 : i32
    return %arg0, %c0_i32, %c0_i32_0 : i32, i32, i32
  }
  func.func @transform_1(%arg0: i32) -> (i32, i32) {
    %c0_i32 = arith.constant 0 : i32
    %c0_i32_0 = arith.constant 0 : i32
    return %arg0, %c0_i32 : i32, i32
  }
}

</mosaic_0001>

<bundles_post_ra>
// kernel: tpu_custom_call.1
= control target key start
LH: loop header
LB: loop body
LE: loop exit
PB: predicated region body
PF: predicated region fallthrough
CT: control target
= control target key end

     0   :  { %6 = vsyncpa [#allocation3], 0  ;;  %s211_s0 = inlined_call_operand.hbm [shape: f32[8,16,16], index: 0, kind: input, shape index: {}]   ;;  %s212_s1 = inlined_call_operand.hbm [shape: f32[8,32], index: 1, kind: output, shape index: {}]  }
   0x1   :  { %7 = vsyncpa [#allocation4], 0  ;;  %s179_s6 = smov [#allocation2]  }
   0x2   :  { %s13_s7 = sshll.u32 %s179_s6, 4  ;;  %s14_s7 = int_to_ptr.vmem [resolvable:$true] %s13_s7 }
   0x3   :  { %s143_s8 = scalar_lea.vmem %s14_s7, 1024  ;;  %p148_p1 = scmp.lt.s32.totalorder %s14_s7, %s14_s7 }
   0x4   :  { %p144_p0 = scmp.ne.s32.totalorder %s14_s7, %s143_s8  ;;  %p149_p2 = scmp.lt.s32.totalorder %s143_s8, %s143_s8 }
   0x6   :  { %p150_p3 = por %p149_p2, %p148_p1 }
   0x8   :  { %p151_p4 = pnand %p150_p3, %p144_p0 }
   0xa   :  { %154 = shalt.err (!%p151_p4)
}
   0xb   :  { %s180_s9 = smov 256   ;;  %s181_s10 = smov 128  }
   0xc   :  { %s182_s11 = smov 8  }
   0xd   :  { %19 = dma.hbm_to_vmem [thread:$0]  %s211_s0, 1024, %s14_s7, [#allocation3], %s180_s9, %s181_s10, %s182_s11  }
   0xe   :  { %175 = dma.done.wait [#allocation3], 1024  }
   0xf   :  { %176 = vsyncadd [#allocation3], 4294966272  ;;  %vm56_vm0 = vcmask 1041409   ;;  %vm59_vm1 = vcmask 1042434   ;;  %v23_v0 = vld [vmem:[#allocation2] sm:$0x1] }
  0x10   :  { %v24_v1 = vld [vmem:[#allocation2 + $0x8] sm:$0x1]  ;;  %v25_v2 = vld [vmem:[#allocation2 + $0x10] sm:$0x1]  ;;  %vm62_vm2 = vcmask 1043459   ;;  %vm65_vm3 = vcmask 1044484  }
  0x11   :  { %v26_v3 = vld [vmem:[#allocation2 + $0x18] sm:$0x1]  ;;  %v27_v4 = vld [vmem:[#allocation2 + $0x20] sm:$0x1]  ;;  %v28_v5 = vld [vmem:[#allocation2 + $0x28] sm:$0x1] }
  0x12   :  { %v29_v6 = vld [vmem:[#allocation2 + $0x30] sm:$0x1]  ;;  %v30_v7 = vld [vmem:[#allocation2 + $0x38] sm:$0x1]  ;;  %v31_v8 = vld [vmem:[#allocation2 + $0x2] sm:$0x1] }
  0x13   :  { %vm68_vm4 = vcmask 1045509   ;;  %v32_v9 = vld [vmem:[#allocation2 + $0xa] sm:$0x1]  ;;  %v33_v10 = vld [vmem:[#allocation2 + $0x12] sm:$0x1]  ;;  %v39_v15 = vsub.f32 %v23_v0, %v31_v8  ;;  %vm71_vm5 = vcmask 1046534  }
  0x14   :  { %v34_v11 = vld [vmem:[#allocation2 + $0x1a] sm:$0x1]  ;;  %v35_v12 = vld [vmem:[#allocation2 + $0x22] sm:$0x1]  ;;  %v36_v13 = vld [vmem:[#allocation2 + $0x2a] sm:$0x1]  ;;  %v40_v16 = vsub.f32 %v24_v1, %v32_v9  ;;  %v41_v17 = vsub.f32 %v25_v2, %v33_v10 }
  0x15   :  { %v37_v14 = vld [vmem:[#allocation2 + $0x32] sm:$0x1]  ;;  %v42_v18 = vsub.f32 %v26_v3, %v34_v11  ;;  %v38_v19 = vld [vmem:[#allocation2 + $0x3a] sm:$0x1]  ;;  %v43_v20 = vsub.f32 %v27_v4, %v35_v12  ;;  %v44_v21 = vsub.f32 %v28_v5, %v36_v13  ;;  %v79_v23 = vld [vmem:[#allocation2 + $0x1] sm:$0x1] }
  0x16   :  { %v45_v22 = vsub.f32 %v29_v6, %v37_v14  ;;  %v80_v24 = vld [vmem:[#allocation2 + $0x9] sm:$0x1]  ;;  %v46_v25 = vsub.f32 %v30_v7, %v38_v19  ;;  %v55_v26 = vrot.slane %v40_v16, 7  ;;  %v58_v27 = vrot.slane %v41_v17, 6  ;;  %v81_v29 = vld [vmem:[#allocation2 + $0x11] sm:$0x1] }
  0x17   :  { %v61_v28 = vrot.slane %v42_v18, 5  ;;  %v64_v30 = vrot.slane %v43_v20, 4  ;;  %v67_v31 = vrot.slane %v44_v21, 3  ;;  %v82_v33 = vld [vmem:[#allocation2 + $0x19] sm:$0x1]  ;;  %v95_v34 = vrot.slane %v80_v24, 7 }
  0x18   :  { %v70_v32 = vrot.slane %v45_v22, 2  ;;  %v57_v35 = vsel %vm56_vm0, %v55_v26, %v39_v15  ;;  %v73_v36 = vrot.slane %v46_v25, 1  ;;  %v83_v37 = vld [vmem:[#allocation2 + $0x21] sm:$0x1]  ;;  %v84_v38 = vld [vmem:[#allocation2 + $0x29] sm:$0x1] }
  0x19   :  { %v97_v39 = vrot.slane %v81_v29, 6  ;;  %v60_v40 = vsel %vm59_vm1, %v58_v27, %v57_v35  ;;  %v85_v41 = vld [vmem:[#allocation2 + $0x31] sm:$0x1]  ;;  %v86_v42 = vld [vmem:[#allocation2 + $0x39] sm:$0x1]  ;;  %v96_v43 = vsel %vm56_vm0, %v95_v34, %v79_v23  ;;  %v99_v44 = vrot.slane %v82_v33, 5 }
  0x1a   :  { %v101_v45 = vrot.slane %v83_v37, 4  ;;  %v63_v46 = vsel %vm62_vm2, %v61_v28, %v60_v40  ;;  %v103_v48 = vrot.slane %v84_v38, 3  ;;  %v105_v49 = vrot.slane %v85_v41, 2  ;;  %s183_s0 = smov 16   ;;  %s184_s14 = smov [#allocation5]  }
  0x1b   :  { %v98_v47 = vsel %vm59_vm1, %v97_v39, %v96_v43  ;;  %v66_v50 = vsel %vm65_vm3, %v64_v30, %v63_v46  ;;  %v107_v52 = vrot.slane %v86_v42, 1  ;;  %vm74_vm6 = vcmask 1047559   ;;  %s120_s15 = sshll.u32 %s184_s14, 4  ;;  %s121_s15 = int_to_ptr.vmem [resolvable:$true] %s120_s15 }
  0x1c   :  { %v100_v51 = vsel %vm62_vm2, %v99_v44, %v98_v47  ;;  %v69_v53 = vsel %vm68_vm4, %v67_v31, %v66_v50  ;;  %vm77_vm7 = vcmask 130048   ;;  %vm112_vm8 = vcmask 261248   ;;  %s155_s16 = scalar_lea.vmem %s121_s15, 128  ;;  %p160_p6 = scmp.lt.s32.totalorder %s121_s15, %s121_s15 }
  0x1d   :  { %v102_v54 = vsel %vm65_vm3, %v101_v45, %v100_v51  ;;  %v72_v55 = vsel %vm71_vm5, %v70_v32, %v69_v53  ;;  %p156_p5 = scmp.ne.s32.totalorder %s121_s15, %s155_s16  ;;  %p161_p7 = scmp.lt.s32.totalorder %s155_s16, %s155_s16 }
  0x1e   :  { %v104_v56 = vsel %vm68_vm4, %v103_v48, %v102_v54  ;;  %v75_v57 = vsel %vm74_vm6, %v73_v36, %v72_v55 }
  0x1f   :  { %v106_v58 = vsel %vm71_vm5, %v105_v49, %v104_v56  ;;  %78 = vst.msk [vmem:[#allocation5] sm:$0xff] %vm77_vm7, %v75_v57  ;;  %p162_p8 = por %p161_p7, %p160_p6 }
  0x20   :  { %v108_v59 = vsel %vm74_vm6, %v107_v52, %v106_v58 }
  0x21   :  { %109 = vrot.lane.b32.xlu0 %v108_v59, %s183_s0  ;;  %p163_p9 = pnand %p162_p8, %p156_p5 }
  0x93   :  { %v110_v60 = vpop.permute.xlu0 %109 }
  0x94   :  { %113 = vst.msk [vmem:[#allocation5] sm:$0xff] %vm112_vm8, %v110_v60 }
  0x95   :  { %166 = shalt.err (!%p163_p9)
}
  0x96   :  { %123 = dma.vmem_to_hbm [thread:$0]  %s121_s15, 128, %s212_s1, [#allocation4]  }
  0x97   :  { %177 = dma.done.wait [#allocation4], 128  }
  0x98   :  { %178 = vsyncadd [#allocation4], 4294967168 }
  0x99   :  { %127 = vsyncpa [#allocation3], 1 }
  0x9a   :  { %128 = vsyncpa [#allocation4], 1 }

</bundles_post_ra>
